<compile_context>
chip_gen: v7x
topology: tpu7x:2x2x1
jax: 0.10.0
libtpu: 0.0.40
codegen_flags: <defaults>
</compile_context>

<pallas_src>
import functools

import numpy as np
import jax
import jax.numpy as jnp
from jax.experimental import pallas as pl
from jax.experimental.pallas import tpu as pltpu


# ----------------------------------------------------------------------------
# Host-side parameter setup (plain numpy): replicate Resizer.contributions.
# ----------------------------------------------------------------------------
def _cubic(x):
    absx = np.abs(x)
    absx2 = absx ** 2
    absx3 = absx ** 3
    return ((1.5 * absx3 - 2.5 * absx2 + 1) * (absx <= 1) +
            (-0.5 * absx3 + 2.5 * absx2 - 4 * absx + 2) * ((1 < absx) & (absx <= 2)))


def _contributions(in_length, out_length, scale, kernel, kernel_width, antialiasing):
    fixed_kernel = (lambda arg: scale * kernel(scale * arg)) if antialiasing else kernel
    kernel_width = kernel_width / scale if antialiasing else kernel_width
    out_coordinates = np.arange(1, out_length + 1)
    shifted = out_coordinates - (out_length - in_length * scale) / 2
    match_coordinates = shifted / scale + 0.5 * (1 - 1 / scale)
    left_boundary = np.floor(match_coordinates - kernel_width / 2)
    expanded_kernel_width = int(np.ceil(kernel_width)) + 2
    field_of_view = (np.expand_dims(left_boundary, 1)
                     + np.arange(expanded_kernel_width) - 1).astype(np.int64)
    weights = fixed_kernel(np.expand_dims(match_coordinates, 1) - field_of_view - 1)
    sum_weights = np.sum(weights, axis=1)
    sum_weights[sum_weights == 0] = 1.0
    weights = weights / np.expand_dims(sum_weights, 1)
    mirror = np.concatenate((np.arange(in_length), np.arange(in_length - 1, -1, -1)))
    field_of_view = mirror[np.mod(field_of_view, mirror.shape[0])]
    non_zero = np.nonzero(np.any(weights, axis=0))[0]
    weights = weights[:, non_zero]
    field_of_view = field_of_view[:, non_zero]
    return weights, field_of_view


def resize_matrix(in_length, out_length, scale):
    """Dense (out_length, in_length) matrix equivalent to the Resizer's
    gather + weighted-sum along one dim (cubic kernel, antialiasing when
    downsampling, mirror boundary handling)."""
    antialias = scale < 1
    w, fov = _contributions(in_length, out_length, scale, _cubic, 4.0, antialias)
    R = np.zeros((out_length, in_length), dtype=np.float32)
    for i in range(out_length):
        for j in range(fov.shape[1]):
            R[i, int(fov[i, j])] += w[i, j]
    # Affine-cancellation relies on row sums == 1 (guaranteed by normalization
    # except the degenerate sum_weights==0 branch) -- verify once on host.
    assert np.allclose(R.sum(axis=1), 1.0, atol=1e-5), "resize rows must sum to 1"
    return R


# ----------------------------------------------------------------------------
# Pallas kernel: W-resize first (one big-M matmul), then per-slab H-resize
# written straight into the output ref.  Everything stays in f32; no concat,
# no intermediate recast, no VPU passes.
# ----------------------------------------------------------------------------
def _sr_kernel(x_ref, rh_ref, rwt_ref, o_ref, *, slabs, in_h, out_h):
    """x_ref:  (slabs*H, W)    f32 -- `slabs` stacked (H, W) image slabs
       rh_ref: (oH, H)         f32 -- H-resize matrix
       rwt_ref:(W, oW)         f32 -- W-resize matrix, pre-transposed on host
       o_ref:  (slabs*oH, oW)  f32 -- stacked (oH, oW) output slabs
    """
    # Resize along W, fused across all slabs into a single big-M MXU matmul.
    t = jnp.dot(x_ref[...], rwt_ref[...],
                preferred_element_type=jnp.float32)          # (slabs*H, oW) f32
    rh = rh_ref[...]                                         # (oH, H) f32
    # Resize along H: one small matmul per slab (static slices, unrolled);
    # the result is stored directly into the output ref slice (no concat).
    for b in range(slabs):
        y = jnp.dot(rh, t[b * in_h:(b + 1) * in_h, :],
                    preferred_element_type=jnp.float32)      # (oH, oW)
        o_ref[b * out_h:(b + 1) * out_h, :] = y.astype(o_ref.dtype)


# ----------------------------------------------------------------------------
# Wrapper: generation-aware VMEM budgeting, aligned slab batching, free views.
# ----------------------------------------------------------------------------
def _vmem_bytes_per_step(B, H, W, oH, oW):
    x_buf = 2 * B * H * W * 4                 # double-buffered f32 input block
    o_buf = 2 * B * oH * oW * 4               # double-buffered f32 output block
    mats = 2 * (oH * H + W * oW) * 4          # (double-buffered) f32 matrices
    inter = B * H * oW * 4 + B * oH * oW * 4  # f32 intermediate + slab result
    return x_buf + o_buf + mats + inter


def _device_tuning():
    """Per-generation VMEM budget / cap and step-count preference."""
    kind = ""
    try:
        kind = jax.devices()[0].device_kind.lower()
    except Exception:
        pass
    if "v7" in kind:
        # v7x: 64 MiB physical VMEM per TC, grid is sharded across 2 TCs.
        return {"budget": 24 << 20, "cap": 36 << 20, "even_steps": True}
    # v5e / v6e: 128 MiB physical VMEM, single TensorCore -> go big.
    return {"budget": 56 << 20, "cap": 100 << 20, "even_steps": False}


def _choose_slabs(NC, H, W, oH, oW, budget_bytes, prefer_even_steps):
    """Largest slab count B that divides NC, keeps block sublane dims aligned
    (B*H and B*oH multiples of 8, or the full dim), and fits the VMEM budget.
    On v7x prefer an even number of grid steps so both TensorCores get equal
    work."""
    def fits(B):
        return _vmem_bytes_per_step(B, H, W, oH, oW) <= budget_bytes

    def aligned(B):
        return (B == NC) or ((B * H) % 8 == 0 and (B * oH) % 8 == 0)

    divisors = [d for d in range(1, NC + 1) if NC % d == 0]
    cands = [d for d in divisors if aligned(d) and fits(d)]
    if not cands:
        fitting = [d for d in divisors if fits(d)]
        if fits(NC):
            cands = [NC]              # full-dim block always satisfies alignment
        elif fitting:
            cands = [max(fitting)]
        else:
            cands = [1]
    if prefer_even_steps:
        even = [d for d in cands if (NC // d) % 2 == 0]
        multi = [d for d in cands if (NC // d) >= 2]
        cands = even or multi or cands
    return max(cands)


def super_resolution_forward(x, rh, rw_t):
    """x: (N, C, H, W) float32 in [-1, 1];
       rh: (oH, H) f32 resize matrix; rw_t: (W, oW) f32 pre-transposed matrix.
       Returns (N, C, oH, oW) in x.dtype (module's keep_shape=False path)."""
    N, C, H, W = x.shape
    oH = rh.shape[0]
    oW = rw_t.shape[1]
    NC = N * C

    tune = _device_tuning()
    B = _choose_slabs(NC, H, W, oH, oW, tune["budget"], tune["even_steps"])
    steps = NC // B
    assert steps * B == NC

    # Free reshape views (contiguous): no extra HBM passes, no cast, no pad.
    xf = x.reshape(NC * H, W)

    rh_f = jnp.asarray(rh, dtype=jnp.float32)       # (oH, H)
    rwt_f = jnp.asarray(rw_t, dtype=jnp.float32)    # (W, oW)

    est = _vmem_bytes_per_step(B, H, W, oH, oW)
    vmem_limit = int(min(tune["cap"], max(32 << 20, int(est * 1.5))))

    flops = 2 * NC * H * W * oW + 2 * NC * oH * H * oW      # W-resize + H-resize
    bytes_accessed = NC * H * W * 4 + NC * oH * oW * 4 + (oH * H + W * oW) * 4

    kernel = functools.partial(_sr_kernel, slabs=B, in_h=H, out_h=oH)
    out = pl.pallas_call(
        kernel,
        out_shape=jax.ShapeDtypeStruct((NC * oH, oW), x.dtype),
        grid_spec=pltpu.PrefetchScalarGridSpec(
            num_scalar_prefetch=0,
            grid=(steps,),
            in_specs=[
                pl.BlockSpec((B * H, W), lambda i: (i, 0)),
                # constant index_map -> Pallas does not re-DMA across steps
                pl.BlockSpec((oH, H), lambda i: (0, 0)),
                pl.BlockSpec((W, oW), lambda i: (0, 0)),
            ],
            out_specs=pl.BlockSpec((B * oH, oW), lambda i: (i, 0)),
        ),
        compiler_params=pltpu.CompilerParams(
            dimension_semantics=("parallel",),
            vmem_limit_bytes=vmem_limit,
        ),
        cost_estimate=pl.CostEstimate(
            flops=flops, transcendentals=0, bytes_accessed=bytes_accessed),
    )(xf, rh_f, rwt_f)

    return out.reshape(N, C, oH, oW)


if __name__ == "__main__":
    # Small shapes consistent with the module: NCHW, 3 channels (y_channel()==3).
    N, C, H, W = 2, 3, 16, 16
    scale_factor = 2
    oH, oW = H // scale_factor, W // scale_factor

    # Deterministic "parameters": separable resize matrices for scale 1/sf.
    rh_np = resize_matrix(H, oH, 1.0 / scale_factor)      # (oH, H)
    rw_np = resize_matrix(W, oW, 1.0 / scale_factor)      # (oW, W)
    rh = jnp.asarray(rh_np)
    rw_t = jnp.asarray(rw_np.T)                           # pre-transposed (W, oW)

    key = jax.random.PRNGKey(0)
    x = jax.random.uniform(key, (N, C, H, W), dtype=jnp.float32,
                           minval=-1.0, maxval=1.0)

    y = super_resolution_forward(x, rh, rw_t)
    jax.block_until_ready(y)
    assert y.shape == (N, C, oH, oW), y.shape

    # Exact float64 numpy reference (including the module's pre/post affines).
    x_np = np.asarray(x, dtype=np.float64)
    x01 = (x_np + 1.0) / 2.0
    t_ref = np.einsum('oh,nchw->ncow', rh_np.astype(np.float64), x01)
    y01 = np.einsum('ncow,wv->ncov', t_ref, rw_np.T.astype(np.float64))
    y_ref = (y01 - 0.5) / 0.5
    max_err = float(np.max(np.abs(np.asarray(y, dtype=np.float64) - y_ref)))
    assert max_err < 0.05, f"max abs err {max_err}"

    print("KERNEL_OK")
</pallas_src>

<mosaic_0001>
module attributes {stable_mosaic.version = 11 : i64} {
  func.func @_sr_kernel(%arg0: i32, %arg1: memref<96x16xf32, #tpu.memory_space<vmem>>, %arg2: memref<8x16xf32, #tpu.memory_space<vmem>>, %arg3: memref<16x8xf32, #tpu.memory_space<vmem>>, %arg4: memref<48x8xf32, #tpu.memory_space<vmem>>) attributes {dimension_semantics = [#tpu.dimension_semantics<parallel>], iteration_bounds = array<i64: 1>, scalar_prefetch = 0 : i64, scratch_operands = 0 : i64, tpu.core_type = #tpu.core_type<tc>, window_params = [{transform_indices = @transform_0, window_bounds = array<i64: 96, 16>}, {pipeline_mode = #tpu.pipeline_mode<synchronous>, transform_indices = @transform_1, window_bounds = array<i64: 8, 16>}, {pipeline_mode = #tpu.pipeline_mode<synchronous>, transform_indices = @transform_2, window_bounds = array<i64: 16, 8>}, {transform_indices = @transform_3, window_bounds = array<i64: 48, 8>}]} {
    %c0 = arith.constant 0 : index
    %c0_0 = arith.constant 0 : index
    %0 = vector.load %arg1[%c0, %c0_0] : memref<96x16xf32, #tpu.memory_space<vmem>>, vector<96x16xf32>
    %c0_1 = arith.constant 0 : index
    %c0_2 = arith.constant 0 : index
    %1 = vector.load %arg3[%c0_1, %c0_2] : memref<16x8xf32, #tpu.memory_space<vmem>>, vector<16x8xf32>
    %cst = arith.constant dense<0.000000e+00> : vector<96x8xf32>
    %2 = tpu.matmul %0, %1, %cst {dimension_numbers = #tpu.dot_dimension_numbers<[1], [0], [0], [1], [0, 0, 1, 1], [], []>} : vector<96x16xf32>, vector<16x8xf32>, vector<96x8xf32> -> vector<96x8xf32>
    %c0_3 = arith.constant 0 : index
    %c0_4 = arith.constant 0 : index
    %3 = vector.load %arg2[%c0_3, %c0_4] : memref<8x16xf32, #tpu.memory_space<vmem>>, vector<8x16xf32>
    %4 = vector.extract_strided_slice %2 {offsets = [0, 0], sizes = [16, 8], strides = [1, 1]} : vector<96x8xf32> to vector<16x8xf32>
    %cst_5 = arith.constant dense<0.000000e+00> : vector<8x8xf32>
    %5 = tpu.matmul %3, %4, %cst_5 {dimension_numbers = #tpu.dot_dimension_numbers<[1], [0], [0], [1], [0, 0, 1, 1], [], []>} : vector<8x16xf32>, vector<16x8xf32>, vector<8x8xf32> -> vector<8x8xf32>
    %c0_6 = arith.constant 0 : index
    %c0_7 = arith.constant 0 : index
    %6 = vector.load %arg4[%c0_6, %c0_7] : memref<48x8xf32, #tpu.memory_space<vmem>>, vector<8x8xf32>
    tpu.vector_store %arg4[%c0_6, %c0_7], %5 {strides = array<i32>} : memref<48x8xf32, #tpu.memory_space<vmem>>, vector<8x8xf32>,
    %7 = vector.extract_strided_slice %2 {offsets = [16, 0], sizes = [16, 8], strides = [1, 1]} : vector<96x8xf32> to vector<16x8xf32>
    %cst_8 = arith.constant dense<0.000000e+00> : vector<8x8xf32>
    %8 = tpu.matmul %3, %7, %cst_8 {dimension_numbers = #tpu.dot_dimension_numbers<[1], [0], [0], [1], [0, 0, 1, 1], [], []>} : vector<8x16xf32>, vector<16x8xf32>, vector<8x8xf32> -> vector<8x8xf32>
    %c8 = arith.constant 8 : index
    %c0_9 = arith.constant 0 : index
    %9 = vector.load %arg4[%c8, %c0_9] : memref<48x8xf32, #tpu.memory_space<vmem>>, vector<8x8xf32>
    tpu.vector_store %arg4[%c8, %c0_9], %8 {strides = array<i32>} : memref<48x8xf32, #tpu.memory_space<vmem>>, vector<8x8xf32>,
    %10 = vector.extract_strided_slice %2 {offsets = [32, 0], sizes = [16, 8], strides = [1, 1]} : vector<96x8xf32> to vector<16x8xf32>
    %cst_10 = arith.constant dense<0.000000e+00> : vector<8x8xf32>
    %11 = tpu.matmul %3, %10, %cst_10 {dimension_numbers = #tpu.dot_dimension_numbers<[1], [0], [0], [1], [0, 0, 1, 1], [], []>} : vector<8x16xf32>, vector<16x8xf32>, vector<8x8xf32> -> vector<8x8xf32>
    %c16 = arith.constant 16 : index
    %c0_11 = arith.constant 0 : index
    %12 = vector.load %arg4[%c16, %c0_11] : memref<48x8xf32, #tpu.memory_space<vmem>>, vector<8x8xf32>
    tpu.vector_store %arg4[%c16, %c0_11], %11 {strides = array<i32>} : memref<48x8xf32, #tpu.memory_space<vmem>>, vector<8x8xf32>,
    %13 = vector.extract_strided_slice %2 {offsets = [48, 0], sizes = [16, 8], strides = [1, 1]} : vector<96x8xf32> to vector<16x8xf32>
    %cst_12 = arith.constant dense<0.000000e+00> : vector<8x8xf32>
    %14 = tpu.matmul %3, %13, %cst_12 {dimension_numbers = #tpu.dot_dimension_numbers<[1], [0], [0], [1], [0, 0, 1, 1], [], []>} : vector<8x16xf32>, vector<16x8xf32>, vector<8x8xf32> -> vector<8x8xf32>
    %c24 = arith.constant 24 : index
    %c0_13 = arith.constant 0 : index
    %15 = vector.load %arg4[%c24, %c0_13] : memref<48x8xf32, #tpu.memory_space<vmem>>, vector<8x8xf32>
    tpu.vector_store %arg4[%c24, %c0_13], %14 {strides = array<i32>} : memref<48x8xf32, #tpu.memory_space<vmem>>, vector<8x8xf32>,
    %16 = vector.extract_strided_slice %2 {offsets = [64, 0], sizes = [16, 8], strides = [1, 1]} : vector<96x8xf32> to vector<16x8xf32>
    %cst_14 = arith.constant dense<0.000000e+00> : vector<8x8xf32>
    %17 = tpu.matmul %3, %16, %cst_14 {dimension_numbers = #tpu.dot_dimension_numbers<[1], [0], [0], [1], [0, 0, 1, 1], [], []>} : vector<8x16xf32>, vector<16x8xf32>, vector<8x8xf32> -> vector<8x8xf32>
    %c32 = arith.constant 32 : index
    %c0_15 = arith.constant 0 : index
    %18 = vector.load %arg4[%c32, %c0_15] : memref<48x8xf32, #tpu.memory_space<vmem>>, vector<8x8xf32>
    tpu.vector_store %arg4[%c32, %c0_15], %17 {strides = array<i32>} : memref<48x8xf32, #tpu.memory_space<vmem>>, vector<8x8xf32>,
    %19 = vector.extract_strided_slice %2 {offsets = [80, 0], sizes = [16, 8], strides = [1, 1]} : vector<96x8xf32> to vector<16x8xf32>
    %cst_16 = arith.constant dense<0.000000e+00> : vector<8x8xf32>
    %20 = tpu.matmul %3, %19, %cst_16 {dimension_numbers = #tpu.dot_dimension_numbers<[1], [0], [0], [1], [0, 0, 1, 1], [], []>} : vector<8x16xf32>, vector<16x8xf32>, vector<8x8xf32> -> vector<8x8xf32>
    %c40 = arith.constant 40 : index
    %c0_17 = arith.constant 0 : index
    %21 = vector.load %arg4[%c40, %c0_17] : memref<48x8xf32, #tpu.memory_space<vmem>>, vector<8x8xf32>
    tpu.vector_store %arg4[%c40, %c0_17], %20 {strides = array<i32>} : memref<48x8xf32, #tpu.memory_space<vmem>>, vector<8x8xf32>,
    return
  }
  func.func @transform_0(%arg0: i32) -> (i32, i32) {
    %c0_i32 = arith.constant 0 : i32
    %c0_i32_0 = arith.constant 0 : i32
    return %arg0, %c0_i32 : i32, i32
  }
  func.func @transform_1(%arg0: i32) -> (i32, i32) {
    %c0_i32 = arith.constant 0 : i32
    %c0_i32_0 = arith.constant 0 : i32
    %c0_i32_1 = arith.constant 0 : i32
    return %c0_i32, %c0_i32_0 : i32, i32
  }
  func.func @transform_2(%arg0: i32) -> (i32, i32) {
    %c0_i32 = arith.constant 0 : i32
    %c0_i32_0 = arith.constant 0 : i32
    %c0_i32_1 = arith.constant 0 : i32
    return %c0_i32, %c0_i32_0 : i32, i32
  }
  func.func @transform_3(%arg0: i32) -> (i32, i32) {
    %c0_i32 = arith.constant 0 : i32
    %c0_i32_0 = arith.constant 0 : i32
    return %arg0, %c0_i32 : i32, i32
  }
}

</mosaic_0001>

<bundles_post_ra>
// kernel: tpu_custom_call.1
= control target key start
LH: loop header
LB: loop body
LE: loop exit
PB: predicated region body
PF: predicated region fallthrough
CT: control target
= control target key end

     0   :  { %vm28_vm0 = vcmask 130048   ;;  %v764_v15 = vmov 0.0|0.0   ;;  %vm765_vm1 = vmmov 0   ;;  %v766_v16 = vmov 0.0   ;;  %s880_s2 = inlined_call_operand.vmem [shape: f32[16,8], index: 2, kind: input, shape index: {}]   ;;  %s881_s0 = inlined_call_operand.vmem [shape: f32[96,16], index: 0, kind: input, shape index: {}]   ;;  %s882_s1 = inlined_call_operand.vmem [shape: f32[8,16], index: 1, kind: input, shape index: {}]   ;;  %s883_s3 = inlined_call_operand.vmem [shape: f32[48,8], index: 3, kind: output, shape index: {}]  }
   0x1   :  { %v26_v0 = vld [vmem:[%s880_s2] sm:$0xff]  ;;  %v27_v1 = vld [vmem:[%s880_s2 + $0x8] sm:$0xff]  ;;  %v16_v5 = vld [vmem:[%s881_s0 + $0x10] sm:$0xff]  ;;  %743 = vmatprep.subr.bf16.mxu1 %v764_v15  ;;  %701 = vmatprep.mubr.msk.f32.mxu1 %vm765_vm1, %v766_v16  ;;  %vm264_vm2 = vcmask 64512  }
   0x2   :  { %v14_v2 = vld [vmem:[%s881_s0] sm:$0xff]  ;;  %v739_v3 = vpack.c.bf16 %v27_v1, %v26_v0  ;;  %v15_v4 = vld [vmem:[%s881_s0 + $0x8] sm:$0xff]  ;;  %v17_v6 = vld [vmem:[%s881_s0 + $0x18] sm:$0xff] }
   0x3   :  { %679 = vmatprep.mubr.msk.f32.mxu0 %vm28_vm0, %v14_v2  ;;  %v18_v7 = vld [vmem:[%s881_s0 + $0x20] sm:$0xff]  ;;  %v19_v8 = vld [vmem:[%s881_s0 + $0x28] sm:$0xff]  ;;  %v20_v9 = vld [vmem:[%s881_s0 + $0x30] sm:$0xff] }
   0x4   :  { %740 = vmatprep.subr.bf16.mxu0 %v739_v3  ;;  %v21_v10 = vld [vmem:[%s881_s0 + $0x38] sm:$0xff]  ;;  %v22_v11 = vld [vmem:[%s881_s0 + $0x40] sm:$0xff]  ;;  %v23_v12 = vld [vmem:[%s881_s0 + $0x48] sm:$0xff] }
   0x5   :  { %742 = vmatpush3.bf16.msra.mxu0 %v739_v3  ;;  %v24_v13 = vld [vmem:[%s881_s0 + $0x50] sm:$0xff]  ;;  %v25_v14 = vld [vmem:[%s881_s0 + $0x58] sm:$0xff]  ;;  %v190_v21 = vld [vmem:[%s882_s1] sm:$0xff] }
   0x8   :  { %680 = vmatmul.mubr.msk.f32.vlgmr.msra.gmra.mrb[0].mxu0 %vm28_vm0, %v15_v4 }
   0x9   :  { %682 = vmatprep.mubr.msk.f32.mxu0 %vm28_vm0, %v16_v5 }
   0xc   :  { %683 = vmatmul.mubr.msk.f32.gmra.mrb[2].mxu0 %vm28_vm0, %v17_v6 }
   0xd   :  { %685 = vmatprep.mubr.msk.f32.mxu0 %vm28_vm0, %v18_v7 }
  0x10   :  { %686 = vmatmul.mubr.msk.f32.gmra.mrb[4].mxu0 %vm28_vm0, %v19_v8 }
  0x11   :  { %688 = vmatprep.mubr.msk.f32.mxu0 %vm28_vm0, %v20_v9 }
  0x14   :  { %689 = vmatmul.mubr.msk.f32.gmra.mrb[6].mxu0 %vm28_vm0, %v21_v10 }
  0x15   :  { %691 = vmatprep.mubr.msk.f32.mxu0 %vm28_vm0, %v22_v11 }
  0x18   :  { %692 = vmatmul.mubr.msk.f32.gmra.mrb[8].mxu0 %vm28_vm0, %v23_v12 }
  0x19   :  { %694 = vmatprep.mubr.msk.f32.mxu0 %vm28_vm0, %v24_v13 }
  0x1c   :  { %695 = vmatmul.mubr.msk.f32.gmra.mrb[10].mxu0 %vm28_vm0, %v25_v14 }
  0xdb   :  { %v681_v17 = vpop.f32.mrb[0].mxu0 }
  0xdc   :  { %v131_v18 = vpop.f32.mrb[1].mxu0 }
  0xdd   :  { %v744_v19 = vpack.c.bf16 %v681_v17, %v131_v18 }
  0xdf   :  { %v684_v20 = vpop.f32.mrb[2].mxu0  ;;  %745 = vmatpush3.bf16.msra.mxu1 %v744_v19 }
  0xe0   :  { %v141_v22 = vpop.f32.mrb[3].mxu0  ;;  %746 = vmatprep.subr.bf16.mxu1 %v764_v15 }
  0xe1   :  { %v747_v23 = vpack.c.bf16 %v684_v20, %v141_v22 }
  0xe2   :  { %702 = vmatmul.mubr.msk.f32.vlgmr.msra.gmra.mrb[0].mxu1 %vm28_vm0, %v190_v21 }
  0xe3   :  { %v687_v24 = vpop.f32.mrb[4].mxu0  ;;  %748 = vmatpush3.bf16.msra.mxu1 %v747_v23  ;;  %708 = vmatprep.mubr.msk.f32.mxu1 %vm765_vm1, %v766_v16 }
  0xe4   :  { %v151_v25 = vpop.f32.mrb[5].mxu0  ;;  %749 = vmatprep.subr.bf16.mxu1 %v764_v15 }
  0xe5   :  { %v750_v26 = vpack.c.bf16 %v687_v24, %v151_v25 }
  0xe6   :  { %709 = vmatmul.mubr.msk.f32.vlgmr.msra.gmra.mrb[2].mxu1 %vm28_vm0, %v190_v21 }
  0xe7   :  { %v690_v27 = vpop.f32.mrb[6].mxu0  ;;  %751 = vmatpush3.bf16.msra.mxu1 %v750_v26  ;;  %715 = vmatprep.mubr.msk.f32.mxu1 %vm765_vm1, %v766_v16 }
  0xe8   :  { %v161_v28 = vpop.f32.mrb[7].mxu0  ;;  %752 = vmatprep.subr.bf16.mxu1 %v764_v15 }
  0xe9   :  { %v753_v29 = vpack.c.bf16 %v690_v27, %v161_v28 }
  0xea   :  { %716 = vmatmul.mubr.msk.f32.vlgmr.msra.gmra.mrb[4].mxu1 %vm28_vm0, %v190_v21 }
  0xeb   :  { %v693_v30 = vpop.f32.mrb[8].mxu0  ;;  %754 = vmatpush3.bf16.msra.mxu1 %v753_v29  ;;  %722 = vmatprep.mubr.msk.f32.mxu1 %vm765_vm1, %v766_v16 }
  0xec   :  { %v171_v31 = vpop.f32.mrb[9].mxu0  ;;  %755 = vmatprep.subr.bf16.mxu1 %v764_v15 }
  0xed   :  { %v756_v32 = vpack.c.bf16 %v693_v30, %v171_v31 }
  0xee   :  { %723 = vmatmul.mubr.msk.f32.vlgmr.msra.gmra.mrb[6].mxu1 %vm28_vm0, %v190_v21 }
  0xef   :  { %v696_v33 = vpop.f32.mrb[10].mxu0  ;;  %757 = vmatpush3.bf16.msra.mxu1 %v756_v32  ;;  %729 = vmatprep.mubr.msk.f32.mxu1 %vm765_vm1, %v766_v16 }
  0xf0   :  { %v181_v34 = vpop.f32.mrb[11].mxu0  ;;  %758 = vmatprep.subr.bf16.mxu1 %v764_v15 }
  0xf1   :  { %v759_v35 = vpack.c.bf16 %v696_v33, %v181_v34 }
  0xf2   :  { %730 = vmatmul.mubr.msk.f32.vlgmr.msra.gmra.mrb[8].mxu1 %vm28_vm0, %v190_v21 }
  0xf3   :  { %760 = vmatpush3.bf16.msra.mxu1 %v759_v35  ;;  %736 = vmatprep.mubr.msk.f32.mxu1 %vm765_vm1, %v766_v16 }
  0xf6   :  { %737 = vmatmul.mubr.msk.f32.vlgmr.msra.gmra.mrb[10].mxu1 %vm28_vm0, %v190_v21 }
 0x1b5   :  { %v260_v36 = vpop.f32.mrb[0].mxu1 }
 0x1b6   :  { %265 = vst.msk [vmem:[%s883_s3] sm:$0xff] %vm264_vm2, %v260_v36  ;;  %v703_v37 = vpop.f32.mrb[1].mxu1 }
 0x1b9   :  { %v332_v38 = vpop.f32.mrb[2].mxu1 }
 0x1ba   :  { %336 = vst.msk [vmem:[%s883_s3 + $0x8] sm:$0xff] %vm264_vm2, %v332_v38  ;;  %v710_v39 = vpop.f32.mrb[3].mxu1 }
 0x1bd   :  { %v403_v40 = vpop.f32.mrb[4].mxu1 }
 0x1be   :  { %407 = vst.msk [vmem:[%s883_s3 + $0x10] sm:$0xff] %vm264_vm2, %v403_v40  ;;  %v717_v41 = vpop.f32.mrb[5].mxu1 }
 0x1c1   :  { %v474_v42 = vpop.f32.mrb[6].mxu1 }
 0x1c2   :  { %478 = vst.msk [vmem:[%s883_s3 + $0x18] sm:$0xff] %vm264_vm2, %v474_v42  ;;  %v724_v43 = vpop.f32.mrb[7].mxu1 }
 0x1c5   :  { %v545_v44 = vpop.f32.mrb[8].mxu1 }
 0x1c6   :  { %549 = vst.msk [vmem:[%s883_s3 + $0x20] sm:$0xff] %vm264_vm2, %v545_v44  ;;  %v731_v45 = vpop.f32.mrb[9].mxu1 }
 0x1c9   :  { %v616_v46 = vpop.f32.mrb[10].mxu1 }
 0x1ca   :  { %620 = vst.msk [vmem:[%s883_s3 + $0x28] sm:$0xff] %vm264_vm2, %v616_v46  ;;  %v738_v47 = vpop.f32.mrb[11].mxu1 }

</bundles_post_ra>
